<compile_context>
chip_gen: v6e
topology: v6e:2x2x1
jax: 0.10.0
libtpu: 0.0.40
codegen_flags: <defaults>
</compile_context>

<pallas_src>
import jax
import jax.numpy as jnp
from jax import lax
from jax.experimental import pallas as pl
from jax.experimental.pallas import tpu as pltpu


def _predictor_kernel(x_ref, w_ref, b_ref, o_ref):
    # x_ref: (TB, H)   batch tile (rows on sublanes, H on lanes)
    # w_ref: (OUT, H)  nn.Linear layout, resident across all batch tiles
    # b_ref: (OUT, 1)
    # o_ref: (OUT, TB) transposed, lane-dense output (lanes = batch tile)
    x = x_ref[...]
    w = w_ref[...]
    b = b_ref[...]

    # logits^T = W @ x^T : contract the H axis of both operands on the MXU.
    # (If the surrounding model tolerates bf16, casting x/w here halves HBM
    #  traffic; kept f32 to match the reference bit-for-bit at 1e-5 tol.)
    logits_t = lax.dot_general(
        w, x,
        dimension_numbers=(((1,), (1,)), ((), ())),
        preferred_element_type=jnp.float32,
    ) + b                                              # (OUT, TB) == (2, TB)

    # 2-class closed-form log-softmax over the size-2 sublane (class) axis:
    #   lse = max + log(1 + exp(min - max));  out = logits - lse
    # Pure VPU max/min + one EUP exp + one EUP log; no XLU lane reduction.
    l0 = logits_t[0:1, :]
    l1 = logits_t[1:2, :]
    m = jnp.maximum(l0, l1)
    mn = jnp.minimum(l0, l1)
    lse = m + jnp.log(1.0 + jnp.exp(mn - m))           # (1, TB)

    o_ref[...] = (logits_t - lse).astype(o_ref.dtype)  # broadcast over classes


def predictor_forward(x, weight, bias, *, block_rows=1024):
    """LogSoftmax(dim=1)(x @ weight.T + bias).

    x:      (B, H) float32
    weight: (OUT, H) float32  (PyTorch nn.Linear layout, passed as-is)
    bias:   (OUT,)  float32
    returns (B, OUT) float32
    """
    B, H = x.shape
    OUT = weight.shape[0]

    # Batch tile: big enough to amortize per-grid-step overhead, multiple of
    # (8, 128) so sublane/lane alignment holds when tiling; small enough that
    # double-buffered inputs + outputs + weights stay far under v7x's VMEM
    # (bytes ~= 2*TB*H*4 + 2*OUT*TB*4 + OUT*H*4  -> ~0.27 MiB at TB=1024).
    tb = B if B <= block_rows else block_rows

    b2d = bias.reshape(OUT, 1)  # 2-D, broadcast along lanes in-kernel

    cost = pl.CostEstimate(
        flops=2 * B * H * OUT,
        transcendentals=2 * B,
        bytes_accessed=(B * H + H * OUT + OUT + B * OUT) * 4,
    )

    out_t = pl.pallas_call(
        _predictor_kernel,
        out_shape=jax.ShapeDtypeStruct((OUT, B), jnp.float32),
        grid_spec=pl.GridSpec(
            grid=(pl.cdiv(B, tb),),
            in_specs=[
                pl.BlockSpec((tb, H), lambda i: (i, 0)),     # x: streamed tiles
                pl.BlockSpec((OUT, H), lambda i: (0, 0)),    # weight: resident
                pl.BlockSpec((OUT, 1), lambda i: (0, 0)),    # bias: resident
            ],
            out_specs=pl.BlockSpec((OUT, tb), lambda i: (0, i)),  # lane-dense
        ),
        compiler_params=pltpu.CompilerParams(
            dimension_semantics=("parallel",),   # independent batch tiles
            vmem_limit_bytes=32 * 1024 * 1024,
        ),
        cost_estimate=cost,
    )(x, weight, b2d)

    # Restore PyTorch (B, OUT) layout; (2, B) -> (B, 2) is negligible traffic.
    return out_t.T


def _reference(x, weight, bias):
    logits = x @ weight.T + bias
    return jax.nn.log_softmax(logits, axis=1)


if __name__ == "__main__":
    key = jax.random.PRNGKey(0)
    k_x, k_w, k_b = jax.random.split(key, 3)

    B, HIDDEN, OUT = 8, 32, 2

    # Deterministic nn.Linear-style init: U(-1/sqrt(in), 1/sqrt(in)).
    bound = 1.0 / (HIDDEN ** 0.5)
    weight = jax.random.uniform(k_w, (OUT, HIDDEN), jnp.float32, -bound, bound)
    bias = jax.random.uniform(k_b, (OUT,), jnp.float32, -bound, bound)

    x = jax.random.normal(k_x, (B, HIDDEN), jnp.float32)

    out = predictor_forward(x, weight, bias)
    jax.block_until_ready(out)

    ref = _reference(x, weight, bias)
    assert out.shape == (B, OUT)
    assert jnp.allclose(out, ref, atol=1e-5, rtol=1e-5)

    print("KERNEL_OK")
</pallas_src>

<mosaic_0001>
module attributes {stable_mosaic.version = 11 : i64} {
  func.func @_predictor_kernel(%arg0: i32, %arg1: memref<8x32xf32, #tpu.memory_space<vmem>>, %arg2: memref<2x32xf32, #tpu.memory_space<vmem>>, %arg3: memref<2x1xf32, #tpu.memory_space<vmem>>, %arg4: memref<2x8xf32, #tpu.memory_space<vmem>>) attributes {dimension_semantics = [#tpu.dimension_semantics<parallel>], iteration_bounds = array<i64: 1>, scalar_prefetch = 0 : i64, scratch_operands = 0 : i64, tpu.core_type = #tpu.core_type<tc>, window_params = [{transform_indices = @transform_0, window_bounds = array<i64: 8, 32>}, {pipeline_mode = #tpu.pipeline_mode<synchronous>, transform_indices = @transform_1, window_bounds = array<i64: 2, 32>}, {pipeline_mode = #tpu.pipeline_mode<synchronous>, transform_indices = @transform_2, window_bounds = array<i64: 2, 1>}, {transform_indices = @transform_3, window_bounds = array<i64: 2, 8>}]} {
    %c0 = arith.constant 0 : index
    %c0_0 = arith.constant 0 : index
    %0 = vector.load %arg1[%c0, %c0_0] : memref<8x32xf32, #tpu.memory_space<vmem>>, vector<8x32xf32>
    %c0_1 = arith.constant 0 : index
    %c0_2 = arith.constant 0 : index
    %1 = vector.load %arg2[%c0_1, %c0_2] : memref<2x32xf32, #tpu.memory_space<vmem>>, vector<2x32xf32>
    %c0_3 = arith.constant 0 : index
    %c0_4 = arith.constant 0 : index
    %2 = vector.load %arg3[%c0_3, %c0_4] : memref<2x1xf32, #tpu.memory_space<vmem>>, vector<2x1xf32>
    %cst = arith.constant dense<0.000000e+00> : vector<2x8xf32>
    %3 = tpu.matmul %1, %0, %cst {dimension_numbers = #tpu.dot_dimension_numbers<[1], [1], [0], [0], [0, 0, 1, 0], [], []>} : vector<2x32xf32>, vector<8x32xf32>, vector<2x8xf32> -> vector<2x8xf32>
    %4 = vector.broadcast %2 : vector<2x1xf32> to vector<2x8xf32>
    %5 = arith.addf %3, %4 : vector<2x8xf32>
    %6 = vector.extract_strided_slice %5 {offsets = [0, 0], sizes = [1, 8], strides = [1, 1]} : vector<2x8xf32> to vector<1x8xf32>
    %7 = vector.extract_strided_slice %5 {offsets = [1, 0], sizes = [1, 8], strides = [1, 1]} : vector<2x8xf32> to vector<1x8xf32>
    %8 = arith.maximumf %6, %7 : vector<1x8xf32>
    %9 = arith.minimumf %6, %7 : vector<1x8xf32>
    %10 = arith.subf %9, %8 : vector<1x8xf32>
    %11 = math.exp %10 : vector<1x8xf32>
    %cst_5 = arith.constant 1.000000e+00 : f32
    %12 = vector.broadcast %cst_5 : f32 to vector<1x8xf32>
    %13 = arith.addf %12, %11 : vector<1x8xf32>
    %14 = math.log %13 : vector<1x8xf32>
    %15 = arith.addf %8, %14 : vector<1x8xf32>
    %16 = vector.broadcast %15 : vector<1x8xf32> to vector<2x8xf32>
    %17 = arith.subf %5, %16 : vector<2x8xf32>
    %c0_6 = arith.constant 0 : index
    %c0_7 = arith.constant 0 : index
    %18 = vector.load %arg4[%c0_6, %c0_7] : memref<2x8xf32, #tpu.memory_space<vmem>>, vector<2x8xf32>
    tpu.vector_store %arg4[%c0_6, %c0_7], %17 {strides = array<i32>} : memref<2x8xf32, #tpu.memory_space<vmem>>, vector<2x8xf32>,
    return
  }
  func.func @transform_0(%arg0: i32) -> (i32, i32) {
    %c0_i32 = arith.constant 0 : i32
    %c0_i32_0 = arith.constant 0 : i32
    return %arg0, %c0_i32 : i32, i32
  }
  func.func @transform_1(%arg0: i32) -> (i32, i32) {
    %c0_i32 = arith.constant 0 : i32
    %c0_i32_0 = arith.constant 0 : i32
    %c0_i32_1 = arith.constant 0 : i32
    return %c0_i32, %c0_i32_0 : i32, i32
  }
  func.func @transform_2(%arg0: i32) -> (i32, i32) {
    %c0_i32 = arith.constant 0 : i32
    %c0_i32_0 = arith.constant 0 : i32
    %c0_i32_1 = arith.constant 0 : i32
    return %c0_i32, %c0_i32_0 : i32, i32
  }
  func.func @transform_3(%arg0: i32) -> (i32, i32) {
    %c0_i32 = arith.constant 0 : i32
    %c0_i32_0 = arith.constant 0 : i32
    return %c0_i32, %arg0 : i32, i32
  }
}

</mosaic_0001>

<bundles_post_ra>
// kernel: tpu_custom_call.1
= control target key start
LH: loop header
LB: loop body
LE: loop exit
PB: predicated region body
PF: predicated region fallthrough
CT: control target
= control target key end

     0   :  { %8 = vsyncpa [#allocation3], 0  ;;  %s246_s0 = inlined_call_operand.hbm [shape: f32[8,32], index: 0, kind: input, shape index: {}]   ;;  %s247_s1 = inlined_call_operand.vmem [shape: f32[2,32], index: 1, kind: input, shape index: {}]   ;;  %s248_s2 = inlined_call_operand.vmem [shape: f32[2,1], index: 2, kind: input, shape index: {}]   ;;  %s249_s3 = inlined_call_operand.hbm [shape: f32[2,8], index: 3, kind: output, shape index: {}]  }
   0x1   :  { %9 = vsyncpa [#allocation4], 0  ;;  %s209_s12 = smov [#allocation2]  }
   0x2   :  { %s16_s13 = sshll.u32 %s209_s12, 4  ;;  %s17_s13 = int_to_ptr.vmem [resolvable:$true] %s16_s13 }
   0x3   :  { %s173_s14 = scalar_lea.vmem %s17_s13, 128  ;;  %p178_p1 = scmp.lt.s32.totalorder %s17_s13, %s17_s13 }
   0x4   :  { %p174_p0 = scmp.ne.s32.totalorder %s17_s13, %s173_s14  ;;  %p179_p2 = scmp.lt.s32.totalorder %s173_s14, %s173_s14 }
   0x6   :  { %p180_p3 = por %p179_p2, %p178_p1 }
   0x8   :  { %p181_p4 = pnand %p180_p3, %p174_p0 }
   0xa   :  { %184 = shalt.err (!%p181_p4)
}
   0xb   :  { %19 = dma.hbm_to_vmem [thread:$0]  %s246_s0, 128, %s17_s13, [#allocation3]  }
   0xc   :  { %205 = dma.done.wait [#allocation3], 128  }
   0xd   :  { %206 = vsyncadd [#allocation3], 4294967168  ;;  %v210_v0 = vmov 0.0   ;;  %vm211_vm0 = vmmov 0   ;;  %v212_v1 = vmov 0   ;;  %vm35_vm1 = vcmask 261120  }
   0xe   :  { %150 = vmatprep.subr.mxu0 %v210_v0  ;;  %152 = vmatprep.mubr.msk.f32.mxu0 %vm211_vm0, %v210_v0  ;;  %v27_v2 = vld [vmem:[#allocation2] sm:$0xff]  ;;  %v124_v16 = vlaneseq  ;;  %s213_s0 = smov [#allocation5]   ;;  %vm129_vm2 = vcmask 58368  }
   0xf   :  { %160 = vset.pattern.permute.xlu0 %v212_v1  ;;  %v29_v3 = vld [vmem:[%s248_s2] sm:$0x3]  ;;  %151 = vmatpush3.xpose.msk.msra.mxu0 %vm35_vm1, %v27_v2 }
  0x10   :  { %v28_v4 = vld [vmem:[%s247_s1] sm:$0x3]  ;;  %32 = vperm.xlu0 %160, %v29_v3   ;;  %v125_v17 = vshrl.u32 %v124_v16, 7  ;;  %s137_s1 = sshll.u32 %s213_s0, 4  ;;  %s138_s1 = int_to_ptr.vmem [resolvable:$true] %s137_s1 }
  0x11   :  { %s185_s2 = scalar_lea.vmem %s138_s1, 32  ;;  %p190_p6 = scmp.lt.s32.totalorder %s138_s1, %s138_s1 }
  0x12   :  { %153 = vmatmul.mubr.msk.f32.vlgmr.msra.gmra.mxu0 %vm35_vm1, %v28_v4  ;;  %v126_v20 = vsub.s32 0, %v125_v17  ;;  %p186_p5 = scmp.ne.s32.totalorder %s138_s1, %s185_s2  ;;  %p191_p7 = scmp.lt.s32.totalorder %s185_s2, %s185_s2 }
  0x14   :  { %p192_p8 = por %p191_p7, %p190_p6 }
  0x16   :  { %p193_p9 = pnand %p192_p8, %p186_p5 }
  0x8b   :  { %v33_v5 = vpop.permute.xlu0 %32 }
  0xd2   :  { %v108_v6 = vpop.f32.mrf.mxu0 }
  0xd3   :  { %v109_v7 = vadd.f32 %v108_v6, %v33_v5 }
  0xd4   :  { %v154_v8 = vpop.f32.mrf.mxu0 }
  0xd5   :  { %v113_v9 = vrot.slane %v109_v7, 1 }
  0xd7   :  { %v115_v10 = vmax.f32 %v109_v7, %v113_v9  ;;  %v116_v11 = vmin.f32 %v109_v7, %v113_v9 }
  0xd9   :  { %v117_v12 = vsub.f32 %v116_v11, %v115_v10 }
  0xdb   :  { %v118_v13 = vmul.f32 1.442695, %v117_v12 }
  0xdd   :  { %161 = vpow2.f32 %v118_v13 }
  0xea   :  { %v162_v14 = vpop.eup %161 }
  0xeb   :  { %v120_v15 = vadd.f32 1.0, %v162_v14 }
  0xed   :  { %163 = vlog2.f32 %v120_v15 }
  0xfa   :  { %v164_v18 = vpop.eup %163 }
  0xfb   :  { %v122_v19 = vmul.f32 0.6931472, %v164_v18 }
  0xfd   :  { %v123_v21 = vadd.f32 %v122_v19, %v115_v10 }
  0xff   :  { %v127_v22 = vrot.slane %v123_v21, %v126_v20 }
 0x101   :  { %v128_v23 = vsub.f32 %v109_v7, %v127_v22 }
 0x103   :  { %130 = vst.msk [vmem:[#allocation5] sm:$0x3] %vm129_vm2, %v128_v23 }
 0x104   :  { %196 = shalt.err (!%p193_p9)
}
 0x105   :  { %140 = dma.vmem_to_hbm [thread:$0]  %s138_s1, 32, %s249_s3, [#allocation4]  }
 0x106   :  { %207 = dma.done.wait [#allocation4], 32  }
 0x107   :  { %208 = vsyncadd [#allocation4], 4294967264 }
 0x108   :  { %144 = vsyncpa [#allocation3], 1 }
 0x109   :  { %145 = vsyncpa [#allocation4], 1 }

</bundles_post_ra>
